<compile_context>
chip_gen: v6e
topology: v6e:2x2x1
jax: 0.10.0
libtpu: 0.0.40
codegen_flags: <defaults>
</compile_context>

<pallas_src>
import jax
import jax.numpy as jnp
from jax.experimental import pallas as pl
from jax.experimental.pallas import tpu as pltpu

HIDDEN = 128
OUT_PAD_MULT = 8            # pad the action dim to a multiple of 8 (NOT 128)
MAX_BATCH_TILE = 2048       # sweep {1024, 2048}; weights are VMEM-resident so bigger amortizes
VMEM_LIMIT_BYTES = 32 << 20 # raise v5e's 16 MiB default scoped VMEM; safe on v6e/v7x


def _round_up(x, m):
    return (x + m - 1) // m * m


def dqn_mlp_kernel(x_ref, w1_ref, b1_ref, w2_ref, b2_ref, w3_ref, b3_ref, o_ref):
    # ---- fc1 + ReLU: bf16 MXU inputs, f32 accumulate, f32 VPU epilogue ----
    h1 = jnp.dot(x_ref[...].astype(jnp.bfloat16), w1_ref[...],
                 preferred_element_type=jnp.float32)
    h1 = jnp.maximum(h1 + b1_ref[...], 0.0)

    # ---- fc2 + ReLU ----
    h2 = jnp.dot(h1.astype(jnp.bfloat16), w2_ref[...],
                 preferred_element_type=jnp.float32)
    h2 = jnp.maximum(h2 + b2_ref[...], 0.0)

    # ---- fc3: narrow (tb, out_pad) output -> minimal HBM writeback ----
    out = jnp.dot(h2.astype(jnp.bfloat16), w3_ref[...],
                  preferred_element_type=jnp.float32)
    o_ref[...] = (out + b3_ref[...]).astype(o_ref.dtype)


def prepare_params(params):
    """One-time kernel-side parameter prep. Call ONCE (outside the training step) and reuse:
    casts MXU weights to bf16 and zero-pads fc3's weight/bias to a multiple of 8 output lanes.
    """
    w1, b1, w2, b2, w3, b3 = params
    action_size = w3.shape[1]
    out_pad = _round_up(action_size, OUT_PAD_MULT)

    w1k = w1.astype(jnp.bfloat16)
    w2k = w2.astype(jnp.bfloat16)
    w3k = jnp.zeros((HIDDEN, out_pad), jnp.bfloat16).at[:, :action_size].set(
        w3.astype(jnp.bfloat16))
    b1k = b1.astype(jnp.float32)
    b2k = b2.astype(jnp.float32)
    b3k = jnp.zeros((1, out_pad), jnp.float32).at[:, :action_size].set(b3)
    return (w1k, b1k, w2k, b2k, w3k, b3k)


def dqn_forward(x, prepped, action_size):
    """x: (batch, state_size) f32; prepped: output of prepare_params (reused across calls)."""
    w1k, b1k, w2k, b2k, w3k, b3k = prepped
    batch, state_size = x.shape
    out_pad = w3k.shape[1]

    # Batch tiling: tile is a multiple of 8, capped at MAX_BATCH_TILE. Force >= 2 grid steps
    # whenever the batch permits so the "parallel" batch axis can shard across v7x's 2 TCs.
    rb = _round_up(batch, 8)
    tb = min(MAX_BATCH_TILE, rb)
    if rb >= 16 and rb // tb < 2:
        tb = _round_up(rb, 16) // 2
    padded_batch = _round_up(batch, tb)
    if padded_batch != batch:
        # Padded rows are computed and sliced off below; no in-kernel masking needed.
        x = jnp.pad(x, ((0, padded_batch - batch), (0, 0)))
    grid = (padded_batch // tb,)

    # Weights/biases: block == full array, index_map always (0, 0) -> VMEM-resident.
    resident = lambda a: pl.BlockSpec(a.shape, lambda i: (0,) * a.ndim)

    out = pl.pallas_call(
        dqn_mlp_kernel,
        out_shape=jax.ShapeDtypeStruct((padded_batch, out_pad), jnp.float32),
        grid_spec=pltpu.PrefetchScalarGridSpec(
            num_scalar_prefetch=0,
            grid=grid,
            in_specs=[
                pl.BlockSpec((tb, state_size), lambda i: (i, 0)),   # x: tiled over batch
                resident(w1k), resident(b1k),
                resident(w2k), resident(b2k),
                resident(w3k), resident(b3k),
            ],
            out_specs=pl.BlockSpec((tb, out_pad), lambda i: (i, 0)),
        ),
        compiler_params=pltpu.CompilerParams(
            # Megacore split of the batch grid on v7x; harmless no-op on v5e/v6e.
            dimension_semantics=("parallel",),
            vmem_limit_bytes=VMEM_LIMIT_BYTES,
        ),
    )(x, w1k, b1k, w2k, b2k, w3k, b3k)

    return out[:batch, :action_size]


def init_params(key, state_size, action_size):
    # Deterministic init mimicking nn.Linear: U(-1/sqrt(fan_in), 1/sqrt(fan_in)).
    def linear(key, fan_in, fan_out):
        kw, kb = jax.random.split(key)
        bound = 1.0 / jnp.sqrt(jnp.float32(fan_in))
        w = jax.random.uniform(kw, (fan_in, fan_out), jnp.float32, -bound, bound)
        b = jax.random.uniform(kb, (1, fan_out), jnp.float32, -bound, bound)
        return w, b

    k1, k2, k3 = jax.random.split(key, 3)
    w1, b1 = linear(k1, state_size, HIDDEN)
    w2, b2 = linear(k2, HIDDEN, HIDDEN)
    w3, b3 = linear(k3, HIDDEN, action_size)
    return w1, b1, w2, b2, w3, b3


def dqn_reference(x, params):
    w1, b1, w2, b2, w3, b3 = params
    h = jnp.maximum(x @ w1 + b1, 0.0)
    h = jnp.maximum(h @ w2 + b2, 0.0)
    return h @ w3 + b3


if __name__ == "__main__":
    state_size = 4      # e.g. CartPole observation dim
    action_size = 2     # e.g. CartPole action dim
    batch = 8

    key = jax.random.PRNGKey(0)
    kx, kp = jax.random.split(key)
    x = jax.random.normal(kx, (batch, state_size), jnp.float32)
    params = init_params(kp, state_size, action_size)

    prepped = prepare_params(params)          # one-time prep, reused across calls
    out = jax.block_until_ready(dqn_forward(x, prepped, action_size))
    ref = dqn_reference(x, params)

    assert out.shape == (batch, action_size)
    # fc1/fc2/fc3 use bf16 MXU inputs with f32 accumulation -> small deviation vs pure-f32 ref.
    assert jnp.allclose(out, ref, atol=2e-2, rtol=2e-2), "mismatch vs JAX reference"

    print("KERNEL_OK")
</pallas_src>

<mosaic_0001>
module attributes {stable_mosaic.version = 11 : i64} {
  func.func @dqn_mlp_kernel(%arg0: i32, %arg1: memref<8x4xf32, #tpu.memory_space<vmem>>, %arg2: memref<4x128xbf16, #tpu.memory_space<vmem>>, %arg3: memref<1x128xf32, #tpu.memory_space<vmem>>, %arg4: memref<128x128xbf16, #tpu.memory_space<vmem>>, %arg5: memref<1x128xf32, #tpu.memory_space<vmem>>, %arg6: memref<128x8xbf16, #tpu.memory_space<vmem>>, %arg7: memref<1x8xf32, #tpu.memory_space<vmem>>, %arg8: memref<8x8xf32, #tpu.memory_space<vmem>>) attributes {dimension_semantics = [#tpu.dimension_semantics<parallel>], iteration_bounds = array<i64: 1>, scalar_prefetch = 0 : i64, scratch_operands = 0 : i64, tpu.core_type = #tpu.core_type<tc>, window_params = [{transform_indices = @transform_0, window_bounds = array<i64: 8, 4>}, {pipeline_mode = #tpu.pipeline_mode<synchronous>, transform_indices = @transform_1, window_bounds = array<i64: 4, 128>}, {pipeline_mode = #tpu.pipeline_mode<synchronous>, transform_indices = @transform_2, window_bounds = array<i64: 1, 128>}, {pipeline_mode = #tpu.pipeline_mode<synchronous>, transform_indices = @transform_3, window_bounds = array<i64: 128, 128>}, {pipeline_mode = #tpu.pipeline_mode<synchronous>, transform_indices = @transform_4, window_bounds = array<i64: 1, 128>}, {pipeline_mode = #tpu.pipeline_mode<synchronous>, transform_indices = @transform_5, window_bounds = array<i64: 128, 8>}, {pipeline_mode = #tpu.pipeline_mode<synchronous>, transform_indices = @transform_6, window_bounds = array<i64: 1, 8>}, {transform_indices = @transform_7, window_bounds = array<i64: 8, 8>}]} {
    %c0 = arith.constant 0 : index
    %c0_0 = arith.constant 0 : index
    %0 = vector.load %arg1[%c0, %c0_0] : memref<8x4xf32, #tpu.memory_space<vmem>>, vector<8x4xf32>
    %1 = arith.truncf %0 : vector<8x4xf32> to vector<8x4xbf16>
    %c0_1 = arith.constant 0 : index
    %c0_2 = arith.constant 0 : index
    %2 = vector.load %arg2[%c0_1, %c0_2] : memref<4x128xbf16, #tpu.memory_space<vmem>>, vector<4x128xbf16>
    %cst = arith.constant dense<0.000000e+00> : vector<8x128xf32>
    %3 = tpu.matmul %1, %2, %cst {dimension_numbers = #tpu.dot_dimension_numbers<[1], [0], [0], [1], [0, 0, 1, 1], [], []>} : vector<8x4xbf16>, vector<4x128xbf16>, vector<8x128xf32> -> vector<8x128xf32>
    %c0_3 = arith.constant 0 : index
    %c0_4 = arith.constant 0 : index
    %4 = vector.load %arg3[%c0_3, %c0_4] : memref<1x128xf32, #tpu.memory_space<vmem>>, vector<1x128xf32>
    %5 = vector.broadcast %4 : vector<1x128xf32> to vector<8x128xf32>
    %6 = arith.addf %3, %5 : vector<8x128xf32>
    %cst_5 = arith.constant 0.000000e+00 : f32
    %7 = vector.broadcast %cst_5 : f32 to vector<8x128xf32>
    %8 = arith.maximumf %6, %7 : vector<8x128xf32>
    %9 = arith.truncf %8 : vector<8x128xf32> to vector<8x128xbf16>
    %c0_6 = arith.constant 0 : index
    %c0_7 = arith.constant 0 : index
    %10 = vector.load %arg4[%c0_6, %c0_7] : memref<128x128xbf16, #tpu.memory_space<vmem>>, vector<128x128xbf16>
    %cst_8 = arith.constant dense<0.000000e+00> : vector<8x128xf32>
    %11 = tpu.matmul %9, %10, %cst_8 {dimension_numbers = #tpu.dot_dimension_numbers<[1], [0], [0], [1], [0, 0, 1, 1], [], []>} : vector<8x128xbf16>, vector<128x128xbf16>, vector<8x128xf32> -> vector<8x128xf32>
    %c0_9 = arith.constant 0 : index
    %c0_10 = arith.constant 0 : index
    %12 = vector.load %arg5[%c0_9, %c0_10] : memref<1x128xf32, #tpu.memory_space<vmem>>, vector<1x128xf32>
    %13 = vector.broadcast %12 : vector<1x128xf32> to vector<8x128xf32>
    %14 = arith.addf %11, %13 : vector<8x128xf32>
    %cst_11 = arith.constant 0.000000e+00 : f32
    %15 = vector.broadcast %cst_11 : f32 to vector<8x128xf32>
    %16 = arith.maximumf %14, %15 : vector<8x128xf32>
    %17 = arith.truncf %16 : vector<8x128xf32> to vector<8x128xbf16>
    %c0_12 = arith.constant 0 : index
    %c0_13 = arith.constant 0 : index
    %18 = vector.load %arg6[%c0_12, %c0_13] : memref<128x8xbf16, #tpu.memory_space<vmem>>, vector<128x8xbf16>
    %cst_14 = arith.constant dense<0.000000e+00> : vector<8x8xf32>
    %19 = tpu.matmul %17, %18, %cst_14 {dimension_numbers = #tpu.dot_dimension_numbers<[1], [0], [0], [1], [0, 0, 1, 1], [], []>} : vector<8x128xbf16>, vector<128x8xbf16>, vector<8x8xf32> -> vector<8x8xf32>
    %c0_15 = arith.constant 0 : index
    %c0_16 = arith.constant 0 : index
    %20 = vector.load %arg7[%c0_15, %c0_16] : memref<1x8xf32, #tpu.memory_space<vmem>>, vector<1x8xf32>
    %21 = vector.broadcast %20 : vector<1x8xf32> to vector<8x8xf32>
    %22 = arith.addf %19, %21 : vector<8x8xf32>
    %c0_17 = arith.constant 0 : index
    %c0_18 = arith.constant 0 : index
    %23 = vector.load %arg8[%c0_17, %c0_18] : memref<8x8xf32, #tpu.memory_space<vmem>>, vector<8x8xf32>
    tpu.vector_store %arg8[%c0_17, %c0_18], %22 {strides = array<i32>} : memref<8x8xf32, #tpu.memory_space<vmem>>, vector<8x8xf32>,
    return
  }
  func.func @transform_0(%arg0: i32) -> (i32, i32) {
    %c0_i32 = arith.constant 0 : i32
    %c0_i32_0 = arith.constant 0 : i32
    return %arg0, %c0_i32 : i32, i32
  }
  func.func @transform_1(%arg0: i32) -> (i32, i32) {
    %c0_i32 = arith.constant 0 : i32
    %c0_i32_0 = arith.constant 0 : i32
    %c0_i32_1 = arith.constant 0 : i32
    return %c0_i32, %c0_i32_0 : i32, i32
  }
  func.func @transform_2(%arg0: i32) -> (i32, i32) {
    %c0_i32 = arith.constant 0 : i32
    %c0_i32_0 = arith.constant 0 : i32
    %c0_i32_1 = arith.constant 0 : i32
    return %c0_i32, %c0_i32_0 : i32, i32
  }
  func.func @transform_3(%arg0: i32) -> (i32, i32) {
    %c0_i32 = arith.constant 0 : i32
    %c0_i32_0 = arith.constant 0 : i32
    %c0_i32_1 = arith.constant 0 : i32
    return %c0_i32, %c0_i32_0 : i32, i32
  }
  func.func @transform_4(%arg0: i32) -> (i32, i32) {
    %c0_i32 = arith.constant 0 : i32
    %c0_i32_0 = arith.constant 0 : i32
    %c0_i32_1 = arith.constant 0 : i32
    return %c0_i32, %c0_i32_0 : i32, i32
  }
  func.func @transform_5(%arg0: i32) -> (i32, i32) {
    %c0_i32 = arith.constant 0 : i32
    %c0_i32_0 = arith.constant 0 : i32
    %c0_i32_1 = arith.constant 0 : i32
    return %c0_i32, %c0_i32_0 : i32, i32
  }
  func.func @transform_6(%arg0: i32) -> (i32, i32) {
    %c0_i32 = arith.constant 0 : i32
    %c0_i32_0 = arith.constant 0 : i32
    %c0_i32_1 = arith.constant 0 : i32
    return %c0_i32, %c0_i32_0 : i32, i32
  }
  func.func @transform_7(%arg0: i32) -> (i32, i32) {
    %c0_i32 = arith.constant 0 : i32
    %c0_i32_0 = arith.constant 0 : i32
    return %arg0, %c0_i32 : i32, i32
  }
}

</mosaic_0001>

<bundles_post_ra>
// kernel: tpu_custom_call.1
= control target key start
LH: loop header
LB: loop body
LE: loop exit
PB: predicated region body
PF: predicated region fallthrough
CT: control target
= control target key end

     0   :  { %vm42_vm0 = vcmask 1041408   ;;  %v455_v2 = vmov 0.0   ;;  %vm456_vm1 = vmmov 0   ;;  %vm38_vm2 = vcmask 31744   ;;  %s584_s0 = inlined_call_operand.vmem [shape: f32[8,4], index: 0, kind: input, shape index: {}]   ;;  %s585_s1 = inlined_call_operand.vmem [shape: bf16[4,128], index: 1, kind: input, shape index: {}]   ;;  %s586_s2 = inlined_call_operand.vmem [shape: f32[1,128], index: 2, kind: input, shape index: {}]   ;;  %s587_s3 = inlined_call_operand.vmem [shape: bf16[128,128], index: 3, kind: input, shape index: {}]   ;;  %s588_s4 = inlined_call_operand.vmem [shape: f32[1,128], index: 4, kind: input, shape index: {}]   ;;  %s589_s5 = inlined_call_operand.vmem [shape: bf16[128,8], index: 5, kind: input, shape index: {}]   ;;  %s590_s6 = inlined_call_operand.vmem [shape: f32[1,8], index: 6, kind: input, shape index: {}]   ;;  %s591_s7 = inlined_call_operand.hbm [shape: f32[8,8], index: 7, kind: output, shape index: {}]  }
   0x1   :  { %v30_v0 = vld [vmem:[%s585_s1] sm:$0x3]  ;;  %368 = vmatprep.subr.bf16.mxu0 %v455_v2  ;;  %370 = vmatprep.mubr.msk.bf16.mxu0 %vm456_vm1, %v455_v2  ;;  %v417_v5 = vld [vmem:[%s587_s3 + $0x38] sm:$0xff]   ;;  %v418_v6 = vld [vmem:[%s587_s3 + $0x30] sm:$0xff]  }
   0x2   :  { %v28_v1 = vld [vmem:[%s584_s0] sm:$0xff]  ;;  %v44_v3 = vsel %vm42_vm0, %v30_v0, 0  ;;  %374 = vmatprep.subr.bf16.mxu1 %v455_v2  ;;  %390 = vmatprep.mubr.msk.bf16.mxu1 %vm456_vm1, %v455_v2  ;;  %v419_v7 = vld [vmem:[%s587_s3 + $0x28] sm:$0xff]  }
   0x3   :  { %v29_v4 = vpack.c.bf16 %v28_v1, %v28_v1  ;;  %369 = vmatpush3.bf16.msra.mxu0 %v44_v3  ;;  %375 = vmatpush3.bf16.msra.mxu1 %v417_v5  ;;  %v420_v8 = vld [vmem:[%s587_s3 + $0x20] sm:$0xff]  }
   0x4   :  { %394 = vmatprep.subr.bf16.mxu0 %v455_v2  ;;  %376 = vmatprep.subr.bf16.mxu1 %v455_v2 }
   0x6   :  { %371 = vmatmul.mubr.msk.bf16.vlgmr.msra.gmra.mxu0 %vm38_vm2, %v29_v4 }
   0x7   :  { %410 = vmatprep.mubr.msk.bf16.mxu0 %vm456_vm1, %v455_v2  ;;  %377 = vmatpush3.bf16.msra.mxu1 %v418_v6 }
   0x8   :  { %378 = vmatprep.subr.bf16.mxu1 %v455_v2 }
   0xb   :  { %379 = vmatpush3.bf16.msra.mxu1 %v419_v7 }
   0xc   :  { %380 = vmatprep.subr.bf16.mxu1 %v455_v2 }
   0xd   :  { %12 = vsyncpa [#allocation3], 0  ;;  %v421_v9 = vld [vmem:[%s587_s3 + $0x18] sm:$0xff]   ;;  %v422_v10 = vld [vmem:[%s587_s3 + $0x10] sm:$0xff]   ;;  %s457_s14 = smov [#allocation2]   ;;  %vm312_vm3 = vcmask 64512  }
   0xe   :  { %v423_v11 = vld [vmem:[%s587_s3 + $0x8] sm:$0xff]   ;;  %v424_v12 = vld [vmem:[%s587_s3] sm:$0xff]   ;;  %v425_v13 = vld [vmem:[%s589_s5 + $0x38] sm:$0xff]   ;;  %s320_s15 = sshll.u32 %s457_s14, 4  ;;  %s321_s15 = int_to_ptr.vmem [resolvable:$true] %s320_s15 }
   0xf   :  { %381 = vmatpush3.bf16.msra.mxu1 %v420_v8  ;;  %395 = vmatpush3.bf16.msra.mxu0 %v425_v13  ;;  %v426_v14 = vld [vmem:[%s589_s5 + $0x30] sm:$0xff]   ;;  %v427_v15 = vld [vmem:[%s589_s5 + $0x28] sm:$0xff]   ;;  %v428_v16 = vld [vmem:[%s589_s5 + $0x20] sm:$0xff]   ;;  %p438_p1 = scmp.lt.s32.totalorder %s321_s15, %s321_s15 }
  0x10   :  { %382 = vmatprep.subr.bf16.mxu1 %v455_v2  ;;  %396 = vmatprep.subr.bf16.mxu0 %v455_v2  ;;  %v429_v17 = vld [vmem:[%s589_s5 + $0x18] sm:$0xff]   ;;  %v430_v18 = vld [vmem:[%s589_s5 + $0x10] sm:$0xff]   ;;  %v328_v19 = vld [vmem:[%s586_s2] ss:$0 sm:$0xff] }
  0x11   :  { %v431_v27 = vld [vmem:[%s589_s5 + $0x8] sm:$0xff]   ;;  %v432_v28 = vld [vmem:[%s589_s5] sm:$0xff]  }
  0x12   :  { %v330_v29 = vld [vmem:[%s588_s4] ss:$0 sm:$0xff]  ;;  %s433_s4 = scalar_lea.vmem %s321_s15, 128 }
  0x13   :  { %383 = vmatpush3.bf16.msra.mxu1 %v421_v9  ;;  %397 = vmatpush3.bf16.msra.mxu0 %v426_v14  ;;  %v339_v37 = vld [vmem:[%s590_s6] ss:$0 sm:$0xff]  ;;  %p434_p0 = scmp.ne.s32.totalorder %s321_s15, %s433_s4  ;;  %p439_p2 = scmp.lt.s32.totalorder %s433_s4, %s433_s4 }
  0x14   :  { %384 = vmatprep.subr.bf16.mxu1 %v455_v2  ;;  %398 = vmatprep.subr.bf16.mxu0 %v455_v2 }
  0x15   :  { %p440_p3 = por %p439_p2, %p438_p1 }
  0x17   :  { %385 = vmatpush3.bf16.msra.mxu1 %v422_v10  ;;  %399 = vmatpush3.bf16.msra.mxu0 %v427_v15  ;;  %p441_p4 = pnand %p440_p3, %p434_p0 }
  0x18   :  { %386 = vmatprep.subr.bf16.mxu1 %v455_v2  ;;  %400 = vmatprep.subr.bf16.mxu0 %v455_v2 }
  0x1b   :  { %387 = vmatpush3.bf16.msra.mxu1 %v423_v11  ;;  %401 = vmatpush3.bf16.msra.mxu0 %v428_v16 }
  0x1c   :  { %388 = vmatprep.subr.bf16.mxu1 %v455_v2  ;;  %402 = vmatprep.subr.bf16.mxu0 %v455_v2 }
  0x1f   :  { %389 = vmatpush3.bf16.msra.mxu1 %v424_v12  ;;  %403 = vmatpush3.bf16.msra.mxu0 %v429_v17 }
  0x20   :  { %404 = vmatprep.subr.bf16.mxu0 %v455_v2 }
  0x23   :  { %405 = vmatpush3.bf16.msra.mxu0 %v430_v18 }
  0x24   :  { %406 = vmatprep.subr.bf16.mxu0 %v455_v2 }
  0x27   :  { %407 = vmatpush3.bf16.msra.mxu0 %v431_v27 }
  0x28   :  { %408 = vmatprep.subr.bf16.mxu0 %v455_v2 }
  0x2b   :  { %409 = vmatpush3.bf16.msra.mxu0 %v432_v28 }
  0xc6   :  { %v80_v20 = vpop.f32.mrf.mxu0 }
  0xc7   :  { %v81_v21 = vadd.f32 %v328_v19, %v80_v20 }
  0xc8   :  { %v372_v22 = vpop.f32.mrf.mxu0 }
  0xc9   :  { %v86_v23 = vmax.f32 %v81_v21, 0.0 }
  0xca   :  { %v83_v24 = vpop.f32.mrf.mxu0 }
  0xcb   :  { %v87_v25 = vpack.c.bf16 %v86_v23, %v86_v23 }
  0xcc   :  { %v373_v26 = vpop.f32.mrf.mxu0 }
  0xcd   :  { %391 = vmatmul.mubr.bf16.vlgmr.msra.gmra.mxu1 %v87_v25 }
 0x18d   :  { %v193_v30 = vpop.f32.mrf.mxu1 }
 0x18e   :  { %v194_v31 = vadd.f32 %v330_v29, %v193_v30 }
 0x18f   :  { %v392_v32 = vpop.f32.mrf.mxu1 }
 0x190   :  { %v199_v33 = vmax.f32 %v194_v31, 0.0 }
 0x191   :  { %v196_v34 = vpop.f32.mrf.mxu1 }
 0x192   :  { %v200_v35 = vpack.c.bf16 %v199_v33, %v199_v33 }
 0x193   :  { %v393_v36 = vpop.f32.mrf.mxu1 }
 0x194   :  { %411 = vmatmul.mubr.bf16.vlgmr.msra.gmra.mxu0 %v200_v35 }
 0x254   :  { %v306_v38 = vpop.f32.mrf.mxu0 }
 0x255   :  { %v307_v39 = vadd.f32 %v339_v37, %v306_v38 }
 0x256   :  { %v412_v40 = vpop.f32.mrf.mxu0 }
 0x257   :  { %313 = vst.msk [vmem:[#allocation2] sm:$0xff] %vm312_vm3, %v307_v39 }
 0x258   :  { %v309_v41 = vpop.f32.mrf.mxu0 }
 0x259   :  { %444 = shalt.err (!%p441_p4)
}
 0x25a   :  { %323 = dma.vmem_to_hbm [thread:$0]  %s321_s15, 128, %s591_s7, [#allocation3]   ;;  %v413_v42 = vpop.f32.mrf.mxu0 }
 0x25b   :  { %453 = dma.done.wait [#allocation3], 128  }
 0x25c   :  { %454 = vsyncadd [#allocation3], 4294967168 }
 0x25d   :  { %327 = vsyncpa [#allocation3], 1 }

</bundles_post_ra>
